<compile_context>
chip_gen: v6e
topology: v6e:2x2x1
jax: 0.10.0
libtpu: 0.0.40
codegen_flags: <defaults>
</compile_context>

<pallas_src>
import functools

import jax
import jax.numpy as jnp
from jax.experimental import pallas as pl
from jax.experimental.pallas import tpu as pltpu


HIDDEN = 64          # per-network hidden width (PyTorch spec)
LANES = 128          # fused width: actor hidden | critic hidden
NEG_MASK = -1e30     # finite "minus infinity" for padded logit lanes
MAX_TILE_B = 2048    # batch-tile cap (mem-bound kernel; safe for v5e VMEM too)


def _round_up(x, m):
    return ((x + m - 1) // m) * m


# ----------------------------------------------------------------------------
# Kernel
# ----------------------------------------------------------------------------
def _fused_actor_critic_kernel(state_ref, w_ref, b_ref, out_ref, *, in_pad, out_dim):
    x = state_ref[...].astype(jnp.bfloat16)              # [TB, in_pad]

    # Static slices into the packed bf16 weight slab (offsets are multiples of 16).
    w1 = w_ref[0:in_pad, :]                               # [in_pad, 128]
    w2 = w_ref[in_pad:in_pad + LANES, :]                  # [128, 128] block-diag
    w3 = w_ref[in_pad + LANES:in_pad + 2 * LANES, :]      # [128, 128] block-diag
    b1 = b_ref[0:1, :]
    b2 = b_ref[1:2, :]
    b3 = b_ref[2:3, :]

    # Fused (actor | critic) MLP: 3 bf16 matmuls (f32 accumulate), 2 tanh.
    h = jnp.tanh(jnp.dot(x, w1, preferred_element_type=jnp.float32) + b1)
    h = jnp.tanh(jnp.dot(h.astype(jnp.bfloat16), w2,
                         preferred_element_type=jnp.float32) + b2)
    z = jnp.dot(h.astype(jnp.bfloat16), w3,
                preferred_element_type=jnp.float32) + b3   # [TB, 128]
    # z columns: 0..out_dim-1 = actor logits, out_dim = critic value, rest = 0.

    col = jax.lax.broadcasted_iota(jnp.int32, z.shape, 1)
    is_logit = col < out_dim

    # Numerically stable log-softmax over the valid logit lanes only.
    logits = jnp.where(is_logit, z, NEG_MASK)
    m = jnp.max(logits, axis=-1, keepdims=True)
    zc = logits - m
    e = jnp.exp(zc)                                       # padded lanes -> 0
    s = jnp.sum(e, axis=-1, keepdims=True)
    log_probs = zc - jnp.log(s)                           # padded lanes ~ -1e30 (finite)
    probs = e * pl.reciprocal(s, approx=False)            # reuse e; no second exp

    entropy = -jnp.sum(jnp.where(is_logit, probs * log_probs, 0.0),
                       axis=-1, keepdims=True)

    # Assemble single lane-dense output slab:
    #   cols 0..A-1 : log-probs, col A : value, col A+1 : entropy.
    out = jnp.where(is_logit, log_probs, 0.0)
    out = out + jnp.where(col == out_dim, z, 0.0)
    out = out + jnp.where(col == out_dim + 1, entropy, 0.0)
    out_ref[...] = out


# ----------------------------------------------------------------------------
# Wrapper
# ----------------------------------------------------------------------------
@functools.partial(jax.jit, static_argnames=("out_dim",))
def actor_critic_forward(state, w_slab, b_slab, *, out_dim):
    """Returns a [B, 128] f32 slab:
       cols 0..A-1 = log-probs, col A = value, col A+1 = entropy."""
    B, in_dim = state.shape
    assert out_dim + 2 <= LANES, "out_dim too large for the packed output layout"
    in_pad = _round_up(max(in_dim, 16), 16)   # 16-row alignment for bf16 slab slices

    if B <= 256:
        tile_b = _round_up(B, 8)
    else:
        # Big tiles (mem-/overhead-bound kernel) but keep grid_b >= 2 so both
        # v7x TensorCores are used via the "parallel" grid axis.
        tile_b = min(MAX_TILE_B, _round_up((B + 1) // 2, 256))
    b_pad = _round_up(B, tile_b)
    grid_b = b_pad // tile_b

    state_p = jnp.pad(state.astype(jnp.float32),
                      ((0, b_pad - B), (0, in_pad - in_dim)))

    kernel = functools.partial(_fused_actor_critic_kernel,
                               in_pad=in_pad, out_dim=out_dim)
    w_rows = in_pad + 2 * LANES
    assert w_slab.shape == (w_rows, LANES) and w_slab.dtype == jnp.bfloat16

    out = pl.pallas_call(
        kernel,
        out_shape=jax.ShapeDtypeStruct((b_pad, LANES), jnp.float32),
        grid_spec=pltpu.PrefetchScalarGridSpec(
            num_scalar_prefetch=0,
            grid=(grid_b,),
            in_specs=[
                pl.BlockSpec((tile_b, in_pad), lambda i: (i, 0)),   # state (streamed)
                pl.BlockSpec((w_rows, LANES), lambda i: (0, 0)),    # weight slab (resident)
                pl.BlockSpec((8, LANES), lambda i: (0, 0)),         # bias slab  (resident)
            ],
            out_specs=pl.BlockSpec((tile_b, LANES), lambda i: (i, 0)),
        ),
        compiler_params=pltpu.CompilerParams(
            dimension_semantics=("parallel",)),
    )(state_p, w_slab, b_slab)
    return out[:B]


# ----------------------------------------------------------------------------
# Parameter init / packing (mirrors nn.Linear: U(-1/sqrt(fan_in), +1/sqrt(fan_in)))
# ----------------------------------------------------------------------------
def init_params(key, in_dim, out_dim):
    def linear(k, fan_in, fan_out):
        kw, kb = jax.random.split(k)
        bound = 1.0 / jnp.sqrt(fan_in)
        w = jax.random.uniform(kw, (fan_in, fan_out), jnp.float32, -bound, bound)
        b = jax.random.uniform(kb, (1, fan_out), jnp.float32, -bound, bound)
        return w, b

    keys = jax.random.split(key, 6)
    aw1, ab1 = linear(keys[0], in_dim, HIDDEN)
    aw2, ab2 = linear(keys[1], HIDDEN, HIDDEN)
    aw3, ab3 = linear(keys[2], HIDDEN, out_dim)
    cw1, cb1 = linear(keys[3], in_dim, HIDDEN)
    cw2, cb2 = linear(keys[4], HIDDEN, HIDDEN)
    cw3, cb3 = linear(keys[5], HIDDEN, 1)
    return dict(aw1=aw1, ab1=ab1, aw2=aw2, ab2=ab2, aw3=aw3, ab3=ab3,
                cw1=cw1, cb1=cb1, cw2=cw2, cb2=cb2, cw3=cw3, cb3=cb3)


def pack_params(params, in_dim, out_dim):
    """Pack the 12 per-layer tensors into one bf16 weight slab + one f32 bias slab."""
    in_pad = _round_up(max(in_dim, 16), 16)

    w1 = jnp.zeros((in_pad, LANES), jnp.float32)
    w1 = w1.at[:in_dim, :HIDDEN].set(params["aw1"])
    w1 = w1.at[:in_dim, HIDDEN:].set(params["cw1"])

    w2 = jnp.zeros((LANES, LANES), jnp.float32)
    w2 = w2.at[:HIDDEN, :HIDDEN].set(params["aw2"])
    w2 = w2.at[HIDDEN:, HIDDEN:].set(params["cw2"])

    w3 = jnp.zeros((LANES, LANES), jnp.float32)
    w3 = w3.at[:HIDDEN, :out_dim].set(params["aw3"])
    w3 = w3.at[HIDDEN:, out_dim:out_dim + 1].set(params["cw3"])

    w_slab = jnp.concatenate([w1, w2, w3], axis=0).astype(jnp.bfloat16)

    b_slab = jnp.zeros((8, LANES), jnp.float32)
    b_slab = b_slab.at[0, :HIDDEN].set(params["ab1"][0])
    b_slab = b_slab.at[0, HIDDEN:].set(params["cb1"][0])
    b_slab = b_slab.at[1, :HIDDEN].set(params["ab2"][0])
    b_slab = b_slab.at[1, HIDDEN:].set(params["cb2"][0])
    b_slab = b_slab.at[2, :out_dim].set(params["ab3"][0])
    b_slab = b_slab.at[2, out_dim].set(params["cb3"][0, 0])
    return w_slab, b_slab


# ----------------------------------------------------------------------------
# Module-level API (matches ActorCritic.evaluate / ActorCritic.act)
# ----------------------------------------------------------------------------
def evaluate(state, action, w_slab, b_slab, out_dim):
    out = actor_critic_forward(state, w_slab, b_slab, out_dim=out_dim)
    log_probs = out[:, :out_dim]
    state_values = out[:, out_dim:out_dim + 1]
    dist_entropy = out[:, out_dim + 1]
    action_logprobs = jnp.take_along_axis(log_probs, action[:, None], axis=-1)[:, 0]
    return action_logprobs, state_values, dist_entropy


def act(state, w_slab, b_slab, out_dim, sample_key):
    """Single kernel call: log-probs + value come out of the same slab."""
    out = actor_critic_forward(state, w_slab, b_slab, out_dim=out_dim)
    log_probs = out[:, :out_dim]
    state_val = out[:, out_dim:out_dim + 1]
    action = jax.random.categorical(sample_key, log_probs, axis=-1)
    action_logprob = jnp.take_along_axis(log_probs, action[:, None], axis=-1)[:, 0]
    return action, action_logprob, state_val


# ----------------------------------------------------------------------------
# Pure-JAX reference (bf16-operand matmuls with f32 accumulate, matching kernel)
# ----------------------------------------------------------------------------
def _reference(state, action, params, out_dim):
    bf16 = jnp.bfloat16

    def dot(a, w):
        return jnp.dot(a.astype(bf16), w.astype(bf16),
                       preferred_element_type=jnp.float32)

    h = jnp.tanh(dot(state, params["aw1"]) + params["ab1"])
    h = jnp.tanh(dot(h, params["aw2"]) + params["ab2"])
    logits = dot(h, params["aw3"]) + params["ab3"]
    log_probs = jax.nn.log_softmax(logits, axis=-1)
    probs = jnp.exp(log_probs)
    onehot = jax.nn.one_hot(action, out_dim, dtype=jnp.float32)
    logprob = jnp.sum(onehot * log_probs, axis=-1)
    entropy = -jnp.sum(probs * log_probs, axis=-1)
    hc = jnp.tanh(dot(state, params["cw1"]) + params["cb1"])
    hc = jnp.tanh(dot(hc, params["cw2"]) + params["cb2"])
    value = dot(hc, params["cw3"]) + params["cb3"]
    return logprob, value, entropy


if __name__ == "__main__":
    B, IN_DIM, OUT_DIM = 8, 8, 4
    ATOL = 2e-3   # bf16-operand matmuls on both sides; small accumulation diffs

    root = jax.random.PRNGKey(0)
    k_params, k_state, k_action, k_sample, k_state2, k_action2 = jax.random.split(root, 6)

    params = init_params(k_params, IN_DIM, OUT_DIM)
    w_slab, b_slab = pack_params(params, IN_DIM, OUT_DIM)
    state = jax.random.normal(k_state, (B, IN_DIM), jnp.float32)
    action = jax.random.randint(k_action, (B,), 0, OUT_DIM)

    # evaluate() path (fully fused, one Pallas kernel call, no one-hot stream)
    logprob, value, entropy = evaluate(state, action, w_slab, b_slab, OUT_DIM)
    jax.block_until_ready((logprob, value, entropy))

    # act() path (one kernel call; sampling done in glue with deterministic key)
    a, a_lp, a_val = act(state, w_slab, b_slab, OUT_DIM, k_sample)
    jax.block_until_ready((a, a_lp, a_val))

    # sanity check vs pure-JAX reference
    ref_lp, ref_val, ref_ent = _reference(state, action, params, OUT_DIM)
    assert jnp.allclose(logprob, ref_lp, atol=ATOL), "logprob mismatch"
    assert jnp.allclose(value, ref_val, atol=ATOL), "value mismatch"
    assert jnp.allclose(entropy, ref_ent, atol=ATOL), "entropy mismatch"

    ref_lp2, ref_val2, _ = _reference(state, a, params, OUT_DIM)
    assert jnp.allclose(a_lp, ref_lp2, atol=ATOL), "act() logprob mismatch"
    assert jnp.allclose(a_val, ref_val2, atol=ATOL), "act() value mismatch"

    # big-batch path: exercises multi-step grid (grid_b >= 2) + padded rows
    B2 = 600
    state2 = jax.random.normal(k_state2, (B2, IN_DIM), jnp.float32)
    action2 = jax.random.randint(k_action2, (B2,), 0, OUT_DIM)
    lp2, val2, ent2 = evaluate(state2, action2, w_slab, b_slab, OUT_DIM)
    jax.block_until_ready((lp2, val2, ent2))
    rlp2, rval2, rent2 = _reference(state2, action2, params, OUT_DIM)
    assert jnp.allclose(lp2, rlp2, atol=ATOL), "big-batch logprob mismatch"
    assert jnp.allclose(val2, rval2, atol=ATOL), "big-batch value mismatch"
    assert jnp.allclose(ent2, rent2, atol=ATOL), "big-batch entropy mismatch"

    print("KERNEL_OK")
</pallas_src>

<mosaic_0001>
module attributes {stable_mosaic.version = 11 : i64} {
  func.func @_fused_actor_critic_kernel(%arg0: i32, %arg1: memref<8x16xf32, #tpu.memory_space<vmem>>, %arg2: memref<272x128xbf16, #tpu.memory_space<vmem>>, %arg3: memref<8x128xf32, #tpu.memory_space<vmem>>, %arg4: memref<8x128xf32, #tpu.memory_space<vmem>>) attributes {dimension_semantics = [#tpu.dimension_semantics<parallel>], iteration_bounds = array<i64: 1>, scalar_prefetch = 0 : i64, scratch_operands = 0 : i64, tpu.core_type = #tpu.core_type<tc>, window_params = [{transform_indices = @transform_0, window_bounds = array<i64: 8, 16>}, {pipeline_mode = #tpu.pipeline_mode<synchronous>, transform_indices = @transform_1, window_bounds = array<i64: 272, 128>}, {pipeline_mode = #tpu.pipeline_mode<synchronous>, transform_indices = @transform_2, window_bounds = array<i64: 8, 128>}, {transform_indices = @transform_3, window_bounds = array<i64: 8, 128>}]} {
    %c0 = arith.constant 0 : index
    %c0_0 = arith.constant 0 : index
    %0 = vector.load %arg1[%c0, %c0_0] : memref<8x16xf32, #tpu.memory_space<vmem>>, vector<8x16xf32>
    %1 = arith.truncf %0 : vector<8x16xf32> to vector<8x16xbf16>
    %c0_1 = arith.constant 0 : index
    %c0_2 = arith.constant 0 : index
    %2 = vector.load %arg2[%c0_1, %c0_2] : memref<272x128xbf16, #tpu.memory_space<vmem>>, vector<16x128xbf16>
    %c16 = arith.constant 16 : index
    %c0_3 = arith.constant 0 : index
    %3 = vector.load %arg2[%c16, %c0_3] : memref<272x128xbf16, #tpu.memory_space<vmem>>, vector<128x128xbf16>
    %c144 = arith.constant 144 : index
    %c0_4 = arith.constant 0 : index
    %4 = vector.load %arg2[%c144, %c0_4] : memref<272x128xbf16, #tpu.memory_space<vmem>>, vector<128x128xbf16>
    %c0_5 = arith.constant 0 : index
    %c0_6 = arith.constant 0 : index
    %5 = vector.load %arg3[%c0_5, %c0_6] : memref<8x128xf32, #tpu.memory_space<vmem>>, vector<1x128xf32>
    %c1 = arith.constant 1 : index
    %c0_7 = arith.constant 0 : index
    %6 = vector.load %arg3[%c1, %c0_7] : memref<8x128xf32, #tpu.memory_space<vmem>>, vector<1x128xf32>
    %c2 = arith.constant 2 : index
    %c0_8 = arith.constant 0 : index
    %7 = vector.load %arg3[%c2, %c0_8] : memref<8x128xf32, #tpu.memory_space<vmem>>, vector<1x128xf32>
    %cst = arith.constant dense<0.000000e+00> : vector<8x128xf32>
    %8 = tpu.matmul %1, %2, %cst {dimension_numbers = #tpu.dot_dimension_numbers<[1], [0], [0], [1], [0, 0, 1, 1], [], []>} : vector<8x16xbf16>, vector<16x128xbf16>, vector<8x128xf32> -> vector<8x128xf32>
    %9 = vector.broadcast %5 : vector<1x128xf32> to vector<8x128xf32>
    %10 = arith.addf %8, %9 : vector<8x128xf32>
    %11 = math.tanh %10 : vector<8x128xf32>
    %12 = arith.truncf %11 : vector<8x128xf32> to vector<8x128xbf16>
    %cst_9 = arith.constant dense<0.000000e+00> : vector<8x128xf32>
    %13 = tpu.matmul %12, %3, %cst_9 {dimension_numbers = #tpu.dot_dimension_numbers<[1], [0], [0], [1], [0, 0, 1, 1], [], []>} : vector<8x128xbf16>, vector<128x128xbf16>, vector<8x128xf32> -> vector<8x128xf32>
    %14 = vector.broadcast %6 : vector<1x128xf32> to vector<8x128xf32>
    %15 = arith.addf %13, %14 : vector<8x128xf32>
    %16 = math.tanh %15 : vector<8x128xf32>
    %17 = arith.truncf %16 : vector<8x128xf32> to vector<8x128xbf16>
    %cst_10 = arith.constant dense<0.000000e+00> : vector<8x128xf32>
    %18 = tpu.matmul %17, %4, %cst_10 {dimension_numbers = #tpu.dot_dimension_numbers<[1], [0], [0], [1], [0, 0, 1, 1], [], []>} : vector<8x128xbf16>, vector<128x128xbf16>, vector<8x128xf32> -> vector<8x128xf32>
    %19 = vector.broadcast %7 : vector<1x128xf32> to vector<8x128xf32>
    %20 = arith.addf %18, %19 : vector<8x128xf32>
    %21 = tpu.iota {dimensions = array<i32: 1>} : vector<8x128xi32>
    %c4_i32 = arith.constant 4 : i32
    %22 = vector.broadcast %c4_i32 : i32 to vector<8x128xi32>
    %23 = arith.cmpi slt, %21, %22 : vector<8x128xi32>
    %cst_11 = arith.constant -1.000000e+30 : f32
    %24 = vector.broadcast %cst_11 : f32 to vector<8x128xf32>
    %25 = arith.select %23, %20, %24 : vector<8x128xi1>, vector<8x128xf32>
    %cst_12 = arith.constant dense<0xFF800000> : vector<8xf32>
    %26 = vector.multi_reduction <maximumf>, %25, %cst_12 [1] : vector<8x128xf32> to vector<8xf32>
    %27 = vector.shape_cast %26 : vector<8xf32> to vector<8x1xf32>
    %28 = vector.broadcast %27 : vector<8x1xf32> to vector<8x128xf32>
    %29 = arith.subf %25, %28 : vector<8x128xf32>
    %30 = math.exp %29 : vector<8x128xf32>
    %cst_13 = arith.constant dense<0.000000e+00> : vector<8xf32>
    %31 = vector.multi_reduction <add>, %30, %cst_13 [1] : vector<8x128xf32> to vector<8xf32>
    %32 = vector.shape_cast %31 : vector<8xf32> to vector<8x1xf32>
    %33 = math.log %32 : vector<8x1xf32>
    %34 = vector.broadcast %33 : vector<8x1xf32> to vector<8x128xf32>
    %35 = arith.subf %29, %34 : vector<8x128xf32>
    %36 = tpu.reciprocal %32 : vector<8x1xf32> -> vector<8x1xf32>
    %37 = vector.broadcast %36 : vector<8x1xf32> to vector<8x128xf32>
    %38 = arith.mulf %30, %37 : vector<8x128xf32>
    %39 = arith.mulf %38, %35 : vector<8x128xf32>
    %cst_14 = arith.constant 0.000000e+00 : f32
    %40 = vector.broadcast %cst_14 : f32 to vector<8x128xf32>
    %41 = arith.select %23, %39, %40 : vector<8x128xi1>, vector<8x128xf32>
    %cst_15 = arith.constant dense<0.000000e+00> : vector<8xf32>
    %42 = vector.multi_reduction <add>, %41, %cst_15 [1] : vector<8x128xf32> to vector<8xf32>
    %43 = vector.shape_cast %42 : vector<8xf32> to vector<8x1xf32>
    %cst_16 = arith.constant 0.000000e+00 : f32
    %44 = vector.broadcast %cst_16 : f32 to vector<8x1xf32>
    %45 = arith.subf %44, %43 : vector<8x1xf32>
    %cst_17 = arith.constant 0.000000e+00 : f32
    %46 = vector.broadcast %cst_17 : f32 to vector<8x128xf32>
    %47 = arith.select %23, %35, %46 : vector<8x128xi1>, vector<8x128xf32>
    %c4_i32_18 = arith.constant 4 : i32
    %48 = vector.broadcast %c4_i32_18 : i32 to vector<8x128xi32>
    %49 = arith.cmpi eq, %21, %48 : vector<8x128xi32>
    %cst_19 = arith.constant 0.000000e+00 : f32
    %50 = vector.broadcast %cst_19 : f32 to vector<8x128xf32>
    %51 = arith.select %49, %20, %50 : vector<8x128xi1>, vector<8x128xf32>
    %52 = arith.addf %47, %51 : vector<8x128xf32>
    %c5_i32 = arith.constant 5 : i32
    %53 = vector.broadcast %c5_i32 : i32 to vector<8x128xi32>
    %54 = arith.cmpi eq, %21, %53 : vector<8x128xi32>
    %cst_20 = arith.constant 0.000000e+00 : f32
    %55 = vector.shape_cast %45 : vector<8x1xf32> to vector<8x1xf32>
    %56 = vector.broadcast %55 : vector<8x1xf32> to vector<8x128xf32>
    %57 = vector.broadcast %cst_20 : f32 to vector<8x128xf32>
    %58 = arith.select %54, %56, %57 : vector<8x128xi1>, vector<8x128xf32>
    %59 = arith.addf %52, %58 : vector<8x128xf32>
    %c0_21 = arith.constant 0 : index
    %c0_22 = arith.constant 0 : index
    %60 = vector.load %arg4[%c0_21, %c0_22] : memref<8x128xf32, #tpu.memory_space<vmem>>, vector<8x128xf32>
    tpu.vector_store %arg4[%c0_21, %c0_22], %59 {strides = array<i32>} : memref<8x128xf32, #tpu.memory_space<vmem>>, vector<8x128xf32>,
    return
  }
  func.func @transform_0(%arg0: i32) -> (i32, i32) {
    %c0_i32 = arith.constant 0 : i32
    %c0_i32_0 = arith.constant 0 : i32
    return %arg0, %c0_i32 : i32, i32
  }
  func.func @transform_1(%arg0: i32) -> (i32, i32) {
    %c0_i32 = arith.constant 0 : i32
    %c0_i32_0 = arith.constant 0 : i32
    %c0_i32_1 = arith.constant 0 : i32
    return %c0_i32, %c0_i32_0 : i32, i32
  }
  func.func @transform_2(%arg0: i32) -> (i32, i32) {
    %c0_i32 = arith.constant 0 : i32
    %c0_i32_0 = arith.constant 0 : i32
    %c0_i32_1 = arith.constant 0 : i32
    return %c0_i32, %c0_i32_0 : i32, i32
  }
  func.func @transform_3(%arg0: i32) -> (i32, i32) {
    %c0_i32 = arith.constant 0 : i32
    %c0_i32_0 = arith.constant 0 : i32
    return %arg0, %c0_i32 : i32, i32
  }
}

</mosaic_0001>

<bundles_post_ra>
// kernel: actor_critic_forward.1
= control target key start
LH: loop header
LB: loop body
LE: loop exit
PB: predicated region body
PF: predicated region fallthrough
CT: control target
= control target key end

     0   :  { %8 = vsyncpa [#allocation3], 0  ;;  %s589_s0 = inlined_call_operand.vmem [shape: f32[8,16], index: 0, kind: input, shape index: {}]   ;;  %s590_s1 = inlined_call_operand.hbm [shape: bf16[272,128], index: 1, kind: input, shape index: {}]   ;;  %s591_s2 = inlined_call_operand.vmem [shape: f32[8,128], index: 2, kind: input, shape index: {}]   ;;  %s592_s3 = inlined_call_operand.hbm [shape: f32[8,128], index: 3, kind: output, shape index: {}]  }
   0x1   :  { %9 = vsyncpa [#allocation4], 0  ;;  %s519_s12 = smov [#allocation2]  }
   0x2   :  { %s17_s13 = sshll.u32 %s519_s12, 4  ;;  %s18_s13 = int_to_ptr.vmem [resolvable:$true] %s17_s13 }
   0x3   :  { %s483_s14 = scalar_lea.vmem %s18_s13, 2176  ;;  %p488_p1 = scmp.lt.s32.totalorder %s18_s13, %s18_s13 }
   0x4   :  { %p484_p0 = scmp.ne.s32.totalorder %s18_s13, %s483_s14  ;;  %p489_p2 = scmp.lt.s32.totalorder %s483_s14, %s483_s14 }
   0x6   :  { %p490_p3 = por %p489_p2, %p488_p1 }
   0x8   :  { %p491_p4 = pnand %p490_p3, %p484_p0 }
   0xa   :  { %494 = shalt.err (!%p491_p4)
}
   0xb   :  { %s520_s15 = smov 64   ;;  %s521_s16 = smov 4  }
   0xc   :  { %23 = dma.hbm_to_vmem [thread:$0]  %s590_s1, 2176, %s18_s13, [#allocation3], %s520_s15, %s520_s15, %s521_s16  }
   0xd   :  { %515 = dma.done.wait [#allocation3], 2176  }
   0xe   :  { %516 = vsyncadd [#allocation3], 4294965120  ;;  %v522_v0 = vmov 0.0   ;;  %vm523_vm0 = vmmov 0   ;;  %v448_v1 = vld [vmem:[#allocation2] sm:$0xff]   ;;  %vm79_vm1 = vcmask 130048   ;;  %v311_v36 = vlaneseq }
   0xf   :  { %396 = vmatprep.subr.bf16.mxu0 %v522_v0  ;;  %398 = vmatprep.mubr.msk.bf16.mxu0 %vm523_vm0, %v522_v0  ;;  %v30_v2 = vld [vmem:[%s589_s0] sm:$0xff]  ;;  %v450_v5 = vld [vmem:[#allocation2 + $0x38] sm:$0xff]   ;;  %v451_v6 = vld [vmem:[#allocation2 + $0x30] sm:$0xff]  }
  0x10   :  { %402 = vmatprep.subr.bf16.mxu1 %v522_v0  ;;  %418 = vmatprep.mubr.msk.bf16.mxu1 %vm523_vm0, %v522_v0  ;;  %v31_v3 = vpack.c.bf16 %v30_v2, %v30_v2  ;;  %v449_v4 = vld [vmem:[#allocation2 + $0x40] sm:$0xff]   ;;  %v452_v7 = vld [vmem:[#allocation2 + $0x28] sm:$0xff]   ;;  %v454_v9 = vld [vmem:[#allocation2 + $0x18] sm:$0xff]   ;;  %v312_v37 = vand.u32 127, %v311_v36 }
  0x11   :  { %397 = vmatpush3.bf16.msra.mxu0 %v448_v1  ;;  %403 = vmatpush3.bf16.msra.mxu1 %v449_v4  ;;  %v453_v8 = vld [vmem:[#allocation2 + $0x20] sm:$0xff]   ;;  %v455_v10 = vld [vmem:[#allocation2 + $0x10] sm:$0xff]   ;;  %v456_v11 = vld [vmem:[#allocation2 + $0x8] sm:$0xff]  }
  0x12   :  { %422 = vmatprep.subr.bf16.mxu0 %v522_v0  ;;  %404 = vmatprep.subr.bf16.mxu1 %v522_v0  ;;  %v457_v12 = vld [vmem:[#allocation2 + $0x80] sm:$0xff]   ;;  %v458_v13 = vld [vmem:[#allocation2 + $0x78] sm:$0xff]   ;;  %v459_v14 = vld [vmem:[#allocation2 + $0x70] sm:$0xff]   ;;  %vm313_vm2 = vcmp.lt.s32.totalorder %v312_v37, 4  ;;  %vm333_vm3 = vcmp.eq.s32.totalorder %v312_v37, 4  ;;  %vm336_vm4 = vcmp.eq.s32.totalorder %v312_v37, 5 }
  0x13   :  { %v355_v15 = vld [vmem:[%s591_s2] ss:$0 sm:$0xff]  ;;  %v460_v23 = vld [vmem:[#allocation2 + $0x68] sm:$0xff]   ;;  %v462_v25 = vld [vmem:[#allocation2 + $0x58] sm:$0xff]  }
  0x14   :  { %399 = vmatmul.mubr.msk.bf16.vlgmr.msra.gmra.mxu0 %vm79_vm1, %v31_v3  ;;  %v461_v24 = vld [vmem:[#allocation2 + $0x60] sm:$0xff]   ;;  %v463_v26 = vld [vmem:[#allocation2 + $0x50] sm:$0xff]   ;;  %v464_v27 = vld [vmem:[#allocation2 + $0x48] sm:$0xff]  }
  0x15   :  { %438 = vmatprep.mubr.msk.bf16.mxu0 %vm523_vm0, %v522_v0  ;;  %405 = vmatpush3.bf16.msra.mxu1 %v450_v5  ;;  %v358_v28 = vld [vmem:[%s591_s2 + $0x1] ss:$0 sm:$0xff]  ;;  %v367_v38 = vld [vmem:[%s591_s2 + $0x2] ss:$0 sm:$0xff]  ;;  %s524_s2 = smov [#allocation5]  }
  0x16   :  { %406 = vmatprep.subr.bf16.mxu1 %v522_v0  ;;  %423 = vmatpush3.bf16.msra.mxu0 %v457_v12  ;;  %s346_s25 = sshll.u32 %s524_s2, 4  ;;  %s347_s25 = int_to_ptr.vmem [resolvable:$true] %s346_s25 }
  0x17   :  { %424 = vmatprep.subr.bf16.mxu0 %v522_v0  ;;  %s495_s26 = scalar_lea.vmem %s347_s25, 128  ;;  %p500_p6 = scmp.lt.s32.totalorder %s347_s25, %s347_s25 }
  0x18   :  { %p496_p5 = scmp.ne.s32.totalorder %s347_s25, %s495_s26  ;;  %p501_p7 = scmp.lt.s32.totalorder %s495_s26, %s495_s26 }
  0x19   :  { %407 = vmatpush3.bf16.msra.mxu1 %v451_v6 }
  0x1a   :  { %408 = vmatprep.subr.bf16.mxu1 %v522_v0  ;;  %425 = vmatpush3.bf16.msra.mxu0 %v458_v13  ;;  %p502_p8 = por %p501_p7, %p500_p6 }
  0x1b   :  { %426 = vmatprep.subr.bf16.mxu0 %v522_v0 }
  0x1c   :  { %p503_p9 = pnand %p502_p8, %p496_p5 }
  0x1d   :  { %409 = vmatpush3.bf16.msra.mxu1 %v452_v7 }
  0x1e   :  { %410 = vmatprep.subr.bf16.mxu1 %v522_v0  ;;  %427 = vmatpush3.bf16.msra.mxu0 %v459_v14 }
  0x1f   :  { %428 = vmatprep.subr.bf16.mxu0 %v522_v0 }
  0x21   :  { %411 = vmatpush3.bf16.msra.mxu1 %v453_v8 }
  0x22   :  { %412 = vmatprep.subr.bf16.mxu1 %v522_v0  ;;  %429 = vmatpush3.bf16.msra.mxu0 %v460_v23 }
  0x23   :  { %430 = vmatprep.subr.bf16.mxu0 %v522_v0 }
  0x25   :  { %413 = vmatpush3.bf16.msra.mxu1 %v454_v9 }
  0x26   :  { %414 = vmatprep.subr.bf16.mxu1 %v522_v0  ;;  %431 = vmatpush3.bf16.msra.mxu0 %v461_v24 }
  0x27   :  { %432 = vmatprep.subr.bf16.mxu0 %v522_v0 }
  0x29   :  { %415 = vmatpush3.bf16.msra.mxu1 %v455_v10 }
  0x2a   :  { %416 = vmatprep.subr.bf16.mxu1 %v522_v0  ;;  %433 = vmatpush3.bf16.msra.mxu0 %v462_v25 }
  0x2b   :  { %434 = vmatprep.subr.bf16.mxu0 %v522_v0 }
  0x2d   :  { %417 = vmatpush3.bf16.msra.mxu1 %v456_v11 }
  0x2e   :  { %435 = vmatpush3.bf16.msra.mxu0 %v463_v26 }
  0x2f   :  { %436 = vmatprep.subr.bf16.mxu0 %v522_v0 }
  0x32   :  { %437 = vmatpush3.bf16.msra.mxu0 %v464_v27 }
  0xd4   :  { %v117_v16 = vpop.f32.mrf.mxu0 }
  0xd5   :  { %v118_v17 = vadd.f32 %v355_v15, %v117_v16 }
  0xd6   :  { %v400_v18 = vpop.f32.mrf.mxu0 }
  0xd7   :  { %465 = vtanh.f32 %v118_v17 }
  0xd8   :  { %v120_v19 = vpop.f32.mrf.mxu0 }
  0xda   :  { %v401_v20 = vpop.f32.mrf.mxu0 }
  0xe4   :  { %v466_v21 = vpop.eup %465 }
  0xe5   :  { %v124_v22 = vpack.c.bf16 %v466_v21, %v466_v21 }
  0xe7   :  { %419 = vmatmul.mubr.bf16.vlgmr.msra.gmra.mxu1 %v124_v22 }
 0x1a7   :  { %v211_v29 = vpop.f32.mrf.mxu1 }
 0x1a8   :  { %v212_v30 = vadd.f32 %v358_v28, %v211_v29 }
 0x1a9   :  { %v420_v31 = vpop.f32.mrf.mxu1 }
 0x1aa   :  { %467 = vtanh.f32 %v212_v30 }
 0x1ab   :  { %v214_v32 = vpop.f32.mrf.mxu1 }
 0x1ad   :  { %v421_v33 = vpop.f32.mrf.mxu1 }
 0x1b7   :  { %v468_v34 = vpop.eup %467 }
 0x1b8   :  { %v218_v35 = vpack.c.bf16 %v468_v34, %v468_v34 }
 0x1ba   :  { %439 = vmatmul.mubr.bf16.vlgmr.msra.gmra.mxu0 %v218_v35 }
 0x27a   :  { %v305_v39 = vpop.f32.mrf.mxu0 }
 0x27b   :  { %v306_v40 = vadd.f32 %v367_v38, %v305_v39 }
 0x27c   :  { %v440_v41 = vpop.f32.mrf.mxu0 }
 0x27d   :  { %v314_v42 = vsel %vm313_vm2, %v306_v40, -1e+30  ;;  %v334_v55 = vsel %vm333_vm3, %v306_v40, 0.0 }
 0x27e   :  { %315 = vmax.xlane.f32.xlu0 %v314_v42  ;;  %v308_v43 = vpop.f32.mrf.mxu0 }
 0x280   :  { %v441_v44 = vpop.f32.mrf.mxu0 }
 0x307   :  { %v316_v45 = vpop.xlane.xlu0 %315 }
 0x308   :  { %v317_v46 = vsub.f32 %v314_v42, %v316_v45 }
 0x30a   :  { %v318_v47 = vmul.f32 1.442695, %v317_v46 }
 0x30c   :  { %469 = vpow2.f32 %v318_v47 }
 0x319   :  { %v470_v48 = vpop.eup %469 }
 0x31a   :  { %320 = vadd.xlane.f32.xlu0 %v470_v48 }
 0x3a3   :  { %v321_v49 = vpop.xlane.xlu0 %320 }
 0x3a4   :  { %471 = vlog2.f32 %v321_v49 }
 0x3a5   :  { %473 = vrcp.f32 %v321_v49 }
 0x3b1   :  { %v472_v50 = vpop.eup %471 }
 0x3b2   :  { %v474_v51 = vpop.eup %473  ;;  %v323_v52 = vmul.f32 0.6931472, %v472_v50 }
 0x3b3   :  { %v326_v54 = vmul.f32 %v474_v51, %v470_v48 }
 0x3b4   :  { %v324_v53 = vsub.f32 %v317_v46, %v323_v52 }
 0x3b6   :  { %v327_v56 = vmul.f32 %v326_v54, %v324_v53  ;;  %v332_v57 = vsel %vm313_vm2, %v324_v53, 0.0 }
 0x3b7   :  { %v335_v58 = vadd.f32 %v334_v55, %v332_v57 }
 0x3b8   :  { %v328_v59 = vsel %vm313_vm2, %v327_v56, 0.0 }
 0x3b9   :  { %329 = vadd.xlane.f32.xlu1 %v328_v59 }
 0x442   :  { %v330_v60 = vpop.xlane.xlu1 %329 }
 0x443   :  { %v331_v61 = vsub.f32 0.0, %v330_v60 }
 0x445   :  { %v337_v62 = vsel %vm336_vm4, %v331_v61, 0.0 }
 0x446   :  { %v338_v63 = vadd.f32 %v337_v62, %v335_v58 }
 0x448   :  { %339 = vst [vmem:[#allocation5] sm:$0xff] %v338_v63 }
 0x449   :  { %506 = shalt.err (!%p503_p9)
}
 0x44a   :  { %349 = dma.vmem_to_hbm [thread:$0]  %s347_s25, 128, %s592_s3, [#allocation4]  }
 0x44b   :  { %517 = dma.done.wait [#allocation4], 128  }
 0x44c   :  { %518 = vsyncadd [#allocation4], 4294967168 }
 0x44d   :  { %353 = vsyncpa [#allocation3], 1 }
 0x44e   :  { %354 = vsyncpa [#allocation4], 1 }

</bundles_post_ra>
